<compile_context>
chip_gen: v5e
topology: v5e:2x2
jax: 0.10.0
libtpu: 0.0.40
codegen_flags: <defaults>
</compile_context>

<pallas_src>
import jax
import jax.numpy as jnp
import numpy as np
from jax.experimental import pallas as pl
from jax.experimental.pallas import tpu as pltpu

# ---- module hyper-parameters (small, consistent with Attention.__init__) ----
B, S = 2, 8            # batch, sequence length
QUERY_DIM = 32         # query_dim
HEADS = 4              # heads
DIM_HEAD = 8           # dim_head
INNER = HEADS * DIM_HEAD      # inner_dim = 32
OUT_DIM = QUERY_DIM           # out_dim defaults to query_dim
EPS = 1e-5
SCALE = DIM_HEAD ** -0.5


def _rms_norm(x, w):
    # diffusers RMSNorm over the last (dim_head) axis: x * rsqrt(mean(x^2)+eps) * w
    var = jnp.mean(x * x, axis=-1, keepdims=True)
    return x * jax.lax.rsqrt(var + EPS) * w


def attn_kernel(x_ref, wq_ref, wk_ref, wv_ref, nq_ref, nk_ref,
                wo_ref, bo_ref, o_ref):
    x = x_ref[...]                                                    # (S, D)

    # Fused projections for ALL heads: one wide MXU matmul each.
    q = jnp.dot(x, wq_ref[...], preferred_element_type=jnp.float32)  # (S, INNER)
    k = jnp.dot(x, wk_ref[...], preferred_element_type=jnp.float32)  # (S, INNER)
    v = jnp.dot(x, wv_ref[...], preferred_element_type=jnp.float32)  # (S, INNER)

    # Split the head-major INNER axis into a leading batch dim: (H, S, dh).
    def split_heads(t):
        return jnp.stack(
            [t[:, h * DIM_HEAD:(h + 1) * DIM_HEAD] for h in range(HEADS)], axis=0)

    qh = split_heads(q)                                               # (H, S, dh)
    kh = split_heads(k)
    vh = split_heads(v)

    # qk_norm == 'rms_norm' (per head over dim_head).  nq/nk refs are (1, dh)
    # and broadcast along the last axis.
    qh = _rms_norm(qh, nq_ref[...])
    kh = _rms_norm(kh, nk_ref[...])

    # Head-batched scaled dot-product attention (leading batch dim on the MXU).
    s = jnp.einsum('hqd,hkd->hqk', qh, kh,
                   preferred_element_type=jnp.float32) * SCALE        # (H, S, S)
    s = s - jnp.max(s, axis=-1, keepdims=True)
    p = jnp.exp(s)
    # Softmax denominator via approximate EUP reciprocal (free slot).
    p = p * pl.reciprocal(jnp.sum(p, axis=-1, keepdims=True), approx=True)
    o = jnp.einsum('hqk,hkd->hqd', p, vh,
                   preferred_element_type=jnp.float32)                # (H, S, dh)

    # Concat heads back to (S, INNER) and apply the single output projection.
    o_cat = jnp.concatenate([o[h] for h in range(HEADS)], axis=-1)    # (S, INNER)
    out = jnp.dot(o_cat, wo_ref[...], preferred_element_type=jnp.float32)
    o_ref[...] = out + bo_ref[...]                                    # (S, OUT)


def flux_attention(x, wq, wk, wv, nq, nk, wo, bo):
    """x: (B,S,D) f32; wq/wk/wv: (D, INNER); nq/nk: (1, dh); wo: (INNER, OUT); bo: (1, OUT)."""
    grid_spec = pltpu.PrefetchScalarGridSpec(
        num_scalar_prefetch=0,
        grid=(B,),
        in_specs=[
            pl.BlockSpec((None, S, QUERY_DIM), lambda b: (b, 0, 0)),   # x, squeezed batch
            pl.BlockSpec((QUERY_DIM, INNER), lambda b: (0, 0)),        # Wq
            pl.BlockSpec((QUERY_DIM, INNER), lambda b: (0, 0)),        # Wk
            pl.BlockSpec((QUERY_DIM, INNER), lambda b: (0, 0)),        # Wv
            pl.BlockSpec((1, DIM_HEAD), lambda b: (0, 0)),             # norm_q weight
            pl.BlockSpec((1, DIM_HEAD), lambda b: (0, 0)),             # norm_k weight
            pl.BlockSpec((INNER, OUT_DIM), lambda b: (0, 0)),          # Wo
            pl.BlockSpec((1, OUT_DIM), lambda b: (0, 0)),              # bo
        ],
        out_specs=pl.BlockSpec((None, S, OUT_DIM), lambda b: (b, 0, 0)),
    )
    return pl.pallas_call(
        attn_kernel,
        out_shape=jax.ShapeDtypeStruct((B, S, OUT_DIM), jnp.float32),
        grid_spec=grid_spec,
        compiler_params=pltpu.CompilerParams(
            dimension_semantics=("parallel",)),   # one batch per TC on v7x
    )(x, wq, wk, wv, nq, nk, wo, bo)


def reference(x, wq, wk, wv, nq, nk, wo, bo):
    # plain-JAX reference mirroring the PyTorch processor semantics
    q = (x @ wq).reshape(B, S, HEADS, DIM_HEAD)
    k = (x @ wk).reshape(B, S, HEADS, DIM_HEAD)
    v = (x @ wv).reshape(B, S, HEADS, DIM_HEAD)
    q = _rms_norm(q, nq[0])
    k = _rms_norm(k, nk[0])
    s = jnp.einsum('bqhd,bkhd->bhqk', q, k) * SCALE
    p = jax.nn.softmax(s, axis=-1)
    o = jnp.einsum('bhqk,bkhd->bqhd', p, v).reshape(B, S, INNER)
    return o @ wo + bo[0]


if __name__ == "__main__":
    key = jax.random.PRNGKey(0)
    k_x, k_q, k_k, k_v, k_o, k_b = jax.random.split(key, 6)

    x = jax.random.normal(k_x, (B, S, QUERY_DIM), dtype=jnp.float32)

    # nn.Linear(query_dim, inner_dim, bias=False): torch weight is (inner, in);
    # the kernel uses x @ W^T, i.e. (D, INNER).  INNER unflattens head-major
    # (h*dh + d), matching .reshape(B, S, H, dh) in the torch processor.
    bound_in = 1.0 / np.sqrt(QUERY_DIM)
    wq_t = jax.random.uniform(k_q, (INNER, QUERY_DIM), jnp.float32, -bound_in, bound_in)
    wk_t = jax.random.uniform(k_k, (INNER, QUERY_DIM), jnp.float32, -bound_in, bound_in)
    wv_t = jax.random.uniform(k_v, (INNER, QUERY_DIM), jnp.float32, -bound_in, bound_in)
    wq, wk, wv = wq_t.T, wk_t.T, wv_t.T

    # RMSNorm(dim_head) weights initialize to ones
    nq = jnp.ones((1, DIM_HEAD), jnp.float32)
    nk = jnp.ones((1, DIM_HEAD), jnp.float32)

    # to_out[0] = nn.Linear(inner_dim, out_dim, bias=True)
    bound_out = 1.0 / np.sqrt(INNER)
    wo_t = jax.random.uniform(k_o, (OUT_DIM, INNER), jnp.float32, -bound_out, bound_out)
    bo = jax.random.uniform(k_b, (1, OUT_DIM), jnp.float32, -bound_out, bound_out)
    wo = wo_t.T                                   # (INNER, OUT)

    out = jax.block_until_ready(flux_attention(x, wq, wk, wv, nq, nk, wo, bo))
    ref = reference(x, wq, wk, wv, nq, nk, wo, bo)

    # Tolerance slightly loosened because the softmax denominator uses the
    # hardware approximate reciprocal (EUP), ~1e-4 relative error.
    np.testing.assert_allclose(np.asarray(out), np.asarray(ref), rtol=2e-3, atol=2e-3)
    print("KERNEL_OK")
</pallas_src>

<mosaic_0001>
module attributes {stable_mosaic.version = 11 : i64} {
  func.func @attn_kernel(%arg0: i32, %arg1: memref<1x8x32xf32, #tpu.memory_space<vmem>>, %arg2: memref<32x32xf32, #tpu.memory_space<vmem>>, %arg3: memref<32x32xf32, #tpu.memory_space<vmem>>, %arg4: memref<32x32xf32, #tpu.memory_space<vmem>>, %arg5: memref<1x8xf32, #tpu.memory_space<vmem>>, %arg6: memref<1x8xf32, #tpu.memory_space<vmem>>, %arg7: memref<32x32xf32, #tpu.memory_space<vmem>>, %arg8: memref<1x32xf32, #tpu.memory_space<vmem>>, %arg9: memref<1x8x32xf32, #tpu.memory_space<vmem>>) attributes {dimension_semantics = [#tpu.dimension_semantics<parallel>], iteration_bounds = array<i64: 2>, scalar_prefetch = 0 : i64, scratch_operands = 0 : i64, tpu.core_type = #tpu.core_type<tc>, window_params = [{transform_indices = @transform_0, window_bounds = array<i64: 1, 8, 32>}, {pipeline_mode = #tpu.pipeline_mode<synchronous>, transform_indices = @transform_1, window_bounds = array<i64: 32, 32>}, {pipeline_mode = #tpu.pipeline_mode<synchronous>, transform_indices = @transform_2, window_bounds = array<i64: 32, 32>}, {pipeline_mode = #tpu.pipeline_mode<synchronous>, transform_indices = @transform_3, window_bounds = array<i64: 32, 32>}, {pipeline_mode = #tpu.pipeline_mode<synchronous>, transform_indices = @transform_4, window_bounds = array<i64: 1, 8>}, {pipeline_mode = #tpu.pipeline_mode<synchronous>, transform_indices = @transform_5, window_bounds = array<i64: 1, 8>}, {pipeline_mode = #tpu.pipeline_mode<synchronous>, transform_indices = @transform_6, window_bounds = array<i64: 32, 32>}, {pipeline_mode = #tpu.pipeline_mode<synchronous>, transform_indices = @transform_7, window_bounds = array<i64: 1, 32>}, {transform_indices = @transform_8, window_bounds = array<i64: 1, 8, 32>}]} {
    %c0 = arith.constant 0 : index
    %c0_0 = arith.constant 0 : index
    %c0_1 = arith.constant 0 : index
    %0 = vector.load %arg1[%c0, %c0_0, %c0_1] : memref<1x8x32xf32, #tpu.memory_space<vmem>>, vector<1x8x32xf32>
    %1 = vector.shape_cast %0 : vector<1x8x32xf32> to vector<8x32xf32>
    %c0_2 = arith.constant 0 : index
    %c0_3 = arith.constant 0 : index
    %2 = vector.load %arg2[%c0_2, %c0_3] : memref<32x32xf32, #tpu.memory_space<vmem>>, vector<32x32xf32>
    %cst = arith.constant dense<0.000000e+00> : vector<8x32xf32>
    %3 = tpu.matmul %1, %2, %cst {dimension_numbers = #tpu.dot_dimension_numbers<[1], [0], [0], [1], [0, 0, 1, 1], [], []>} : vector<8x32xf32>, vector<32x32xf32>, vector<8x32xf32> -> vector<8x32xf32>
    %c0_4 = arith.constant 0 : index
    %c0_5 = arith.constant 0 : index
    %4 = vector.load %arg3[%c0_4, %c0_5] : memref<32x32xf32, #tpu.memory_space<vmem>>, vector<32x32xf32>
    %cst_6 = arith.constant dense<0.000000e+00> : vector<8x32xf32>
    %5 = tpu.matmul %1, %4, %cst_6 {dimension_numbers = #tpu.dot_dimension_numbers<[1], [0], [0], [1], [0, 0, 1, 1], [], []>} : vector<8x32xf32>, vector<32x32xf32>, vector<8x32xf32> -> vector<8x32xf32>
    %c0_7 = arith.constant 0 : index
    %c0_8 = arith.constant 0 : index
    %6 = vector.load %arg4[%c0_7, %c0_8] : memref<32x32xf32, #tpu.memory_space<vmem>>, vector<32x32xf32>
    %cst_9 = arith.constant dense<0.000000e+00> : vector<8x32xf32>
    %7 = tpu.matmul %1, %6, %cst_9 {dimension_numbers = #tpu.dot_dimension_numbers<[1], [0], [0], [1], [0, 0, 1, 1], [], []>} : vector<8x32xf32>, vector<32x32xf32>, vector<8x32xf32> -> vector<8x32xf32>
    %8 = vector.extract_strided_slice %3 {offsets = [0, 0], sizes = [8, 8], strides = [1, 1]} : vector<8x32xf32> to vector<8x8xf32>
    %9 = vector.extract_strided_slice %3 {offsets = [0, 8], sizes = [8, 8], strides = [1, 1]} : vector<8x32xf32> to vector<8x8xf32>
    %10 = vector.extract_strided_slice %3 {offsets = [0, 16], sizes = [8, 8], strides = [1, 1]} : vector<8x32xf32> to vector<8x8xf32>
    %11 = vector.extract_strided_slice %3 {offsets = [0, 24], sizes = [8, 8], strides = [1, 1]} : vector<8x32xf32> to vector<8x8xf32>
    %12 = vector.shape_cast %8 : vector<8x8xf32> to vector<1x8x8xf32>
    %13 = vector.shape_cast %9 : vector<8x8xf32> to vector<1x8x8xf32>
    %14 = vector.shape_cast %10 : vector<8x8xf32> to vector<1x8x8xf32>
    %15 = vector.shape_cast %11 : vector<8x8xf32> to vector<1x8x8xf32>
    %16 = tpu.concatenate %12, %13, %14, %15 in 0 : vector<1x8x8xf32>, vector<1x8x8xf32>, vector<1x8x8xf32>, vector<1x8x8xf32> -> vector<4x8x8xf32>
    %17 = vector.extract_strided_slice %5 {offsets = [0, 0], sizes = [8, 8], strides = [1, 1]} : vector<8x32xf32> to vector<8x8xf32>
    %18 = vector.extract_strided_slice %5 {offsets = [0, 8], sizes = [8, 8], strides = [1, 1]} : vector<8x32xf32> to vector<8x8xf32>
    %19 = vector.extract_strided_slice %5 {offsets = [0, 16], sizes = [8, 8], strides = [1, 1]} : vector<8x32xf32> to vector<8x8xf32>
    %20 = vector.extract_strided_slice %5 {offsets = [0, 24], sizes = [8, 8], strides = [1, 1]} : vector<8x32xf32> to vector<8x8xf32>
    %21 = vector.shape_cast %17 : vector<8x8xf32> to vector<1x8x8xf32>
    %22 = vector.shape_cast %18 : vector<8x8xf32> to vector<1x8x8xf32>
    %23 = vector.shape_cast %19 : vector<8x8xf32> to vector<1x8x8xf32>
    %24 = vector.shape_cast %20 : vector<8x8xf32> to vector<1x8x8xf32>
    %25 = tpu.concatenate %21, %22, %23, %24 in 0 : vector<1x8x8xf32>, vector<1x8x8xf32>, vector<1x8x8xf32>, vector<1x8x8xf32> -> vector<4x8x8xf32>
    %26 = vector.extract_strided_slice %7 {offsets = [0, 0], sizes = [8, 8], strides = [1, 1]} : vector<8x32xf32> to vector<8x8xf32>
    %27 = vector.extract_strided_slice %7 {offsets = [0, 8], sizes = [8, 8], strides = [1, 1]} : vector<8x32xf32> to vector<8x8xf32>
    %28 = vector.extract_strided_slice %7 {offsets = [0, 16], sizes = [8, 8], strides = [1, 1]} : vector<8x32xf32> to vector<8x8xf32>
    %29 = vector.extract_strided_slice %7 {offsets = [0, 24], sizes = [8, 8], strides = [1, 1]} : vector<8x32xf32> to vector<8x8xf32>
    %30 = vector.shape_cast %26 : vector<8x8xf32> to vector<1x8x8xf32>
    %31 = vector.shape_cast %27 : vector<8x8xf32> to vector<1x8x8xf32>
    %32 = vector.shape_cast %28 : vector<8x8xf32> to vector<1x8x8xf32>
    %33 = vector.shape_cast %29 : vector<8x8xf32> to vector<1x8x8xf32>
    %34 = tpu.concatenate %30, %31, %32, %33 in 0 : vector<1x8x8xf32>, vector<1x8x8xf32>, vector<1x8x8xf32>, vector<1x8x8xf32> -> vector<4x8x8xf32>
    %c0_10 = arith.constant 0 : index
    %c0_11 = arith.constant 0 : index
    %35 = vector.load %arg5[%c0_10, %c0_11] : memref<1x8xf32, #tpu.memory_space<vmem>>, vector<1x8xf32>
    %36 = arith.mulf %16, %16 : vector<4x8x8xf32>
    %cst_12 = arith.constant dense<0.000000e+00> : vector<4x8xf32>
    %37 = vector.multi_reduction <add>, %36, %cst_12 [2] : vector<4x8x8xf32> to vector<4x8xf32>
    %38 = vector.shape_cast %37 : vector<4x8xf32> to vector<4x8x1xf32>
    %cst_13 = arith.constant 8.000000e+00 : f32
    %39 = vector.broadcast %cst_13 : f32 to vector<4x8x1xf32>
    %40 = arith.divf %38, %39 : vector<4x8x1xf32>
    %cst_14 = arith.constant 9.99999974E-6 : f32
    %41 = vector.broadcast %cst_14 : f32 to vector<4x8x1xf32>
    %42 = arith.addf %40, %41 : vector<4x8x1xf32>
    %43 = math.rsqrt %42 : vector<4x8x1xf32>
    %44 = vector.broadcast %43 : vector<4x8x1xf32> to vector<4x8x8xf32>
    %45 = arith.mulf %16, %44 : vector<4x8x8xf32>
    %46 = vector.shape_cast %35 : vector<1x8xf32> to vector<1x1x8xf32>
    %47 = vector.broadcast %46 : vector<1x1x8xf32> to vector<4x8x8xf32>
    %48 = arith.mulf %45, %47 : vector<4x8x8xf32>
    %c0_15 = arith.constant 0 : index
    %c0_16 = arith.constant 0 : index
    %49 = vector.load %arg6[%c0_15, %c0_16] : memref<1x8xf32, #tpu.memory_space<vmem>>, vector<1x8xf32>
    %50 = arith.mulf %25, %25 : vector<4x8x8xf32>
    %cst_17 = arith.constant dense<0.000000e+00> : vector<4x8xf32>
    %51 = vector.multi_reduction <add>, %50, %cst_17 [2] : vector<4x8x8xf32> to vector<4x8xf32>
    %52 = vector.shape_cast %51 : vector<4x8xf32> to vector<4x8x1xf32>
    %cst_18 = arith.constant 8.000000e+00 : f32
    %53 = vector.broadcast %cst_18 : f32 to vector<4x8x1xf32>
    %54 = arith.divf %52, %53 : vector<4x8x1xf32>
    %cst_19 = arith.constant 9.99999974E-6 : f32
    %55 = vector.broadcast %cst_19 : f32 to vector<4x8x1xf32>
    %56 = arith.addf %54, %55 : vector<4x8x1xf32>
    %57 = math.rsqrt %56 : vector<4x8x1xf32>
    %58 = vector.broadcast %57 : vector<4x8x1xf32> to vector<4x8x8xf32>
    %59 = arith.mulf %25, %58 : vector<4x8x8xf32>
    %60 = vector.shape_cast %49 : vector<1x8xf32> to vector<1x1x8xf32>
    %61 = vector.broadcast %60 : vector<1x1x8xf32> to vector<4x8x8xf32>
    %62 = arith.mulf %59, %61 : vector<4x8x8xf32>
    "tpu.trace_start"() <{level = 10 : i32, message = "hqd,hkd->hqk"}> : () -> ()
    %cst_20 = arith.constant dense<0.000000e+00> : vector<4x8x8xf32>
    %63 = tpu.matmul %48, %62, %cst_20 {dimension_numbers = #tpu.dot_dimension_numbers<[2], [2], [1], [1], [0, 0, 0, 1, 1, 1], [0], [0]>} : vector<4x8x8xf32>, vector<4x8x8xf32>, vector<4x8x8xf32> -> vector<4x8x8xf32>
    "tpu.trace_stop"() : () -> ()
    %cst_21 = arith.constant 0.353553385 : f32
    %64 = vector.broadcast %cst_21 : f32 to vector<4x8x8xf32>
    %65 = arith.mulf %63, %64 : vector<4x8x8xf32>
    %cst_22 = arith.constant dense<0xFF800000> : vector<4x8xf32>
    %66 = vector.multi_reduction <maximumf>, %65, %cst_22 [2] : vector<4x8x8xf32> to vector<4x8xf32>
    %67 = vector.shape_cast %66 : vector<4x8xf32> to vector<4x8x1xf32>
    %68 = vector.broadcast %67 : vector<4x8x1xf32> to vector<4x8x8xf32>
    %69 = arith.subf %65, %68 : vector<4x8x8xf32>
    %70 = math.exp %69 : vector<4x8x8xf32>
    %cst_23 = arith.constant dense<0.000000e+00> : vector<4x8xf32>
    %71 = vector.multi_reduction <add>, %70, %cst_23 [2] : vector<4x8x8xf32> to vector<4x8xf32>
    %72 = vector.shape_cast %71 : vector<4x8xf32> to vector<4x8x1xf32>
    %73 = tpu.reciprocal %72 {approx = true} : vector<4x8x1xf32> -> vector<4x8x1xf32>
    %74 = vector.broadcast %73 : vector<4x8x1xf32> to vector<4x8x8xf32>
    %75 = arith.mulf %70, %74 : vector<4x8x8xf32>
    "tpu.trace_start"() <{level = 10 : i32, message = "hqk,hkd->hqd"}> : () -> ()
    %cst_24 = arith.constant dense<0.000000e+00> : vector<4x8x8xf32>
    %76 = tpu.matmul %75, %34, %cst_24 {dimension_numbers = #tpu.dot_dimension_numbers<[2], [1], [1], [2], [0, 0, 0, 1, 1, 2], [0], [0]>} : vector<4x8x8xf32>, vector<4x8x8xf32>, vector<4x8x8xf32> -> vector<4x8x8xf32>
    "tpu.trace_stop"() : () -> ()
    %77 = vector.extract_strided_slice %76 {offsets = [0, 0, 0], sizes = [1, 8, 8], strides = [1, 1, 1]} : vector<4x8x8xf32> to vector<1x8x8xf32>
    %78 = vector.shape_cast %77 : vector<1x8x8xf32> to vector<8x8xf32>
    %79 = vector.extract_strided_slice %76 {offsets = [1, 0, 0], sizes = [1, 8, 8], strides = [1, 1, 1]} : vector<4x8x8xf32> to vector<1x8x8xf32>
    %80 = vector.shape_cast %79 : vector<1x8x8xf32> to vector<8x8xf32>
    %81 = vector.extract_strided_slice %76 {offsets = [2, 0, 0], sizes = [1, 8, 8], strides = [1, 1, 1]} : vector<4x8x8xf32> to vector<1x8x8xf32>
    %82 = vector.shape_cast %81 : vector<1x8x8xf32> to vector<8x8xf32>
    %83 = vector.extract_strided_slice %76 {offsets = [3, 0, 0], sizes = [1, 8, 8], strides = [1, 1, 1]} : vector<4x8x8xf32> to vector<1x8x8xf32>
    %84 = vector.shape_cast %83 : vector<1x8x8xf32> to vector<8x8xf32>
    %85 = tpu.concatenate %78, %80, %82, %84 in 1 : vector<8x8xf32>, vector<8x8xf32>, vector<8x8xf32>, vector<8x8xf32> -> vector<8x32xf32>
    %c0_25 = arith.constant 0 : index
    %c0_26 = arith.constant 0 : index
    %86 = vector.load %arg7[%c0_25, %c0_26] : memref<32x32xf32, #tpu.memory_space<vmem>>, vector<32x32xf32>
    %cst_27 = arith.constant dense<0.000000e+00> : vector<8x32xf32>
    %87 = tpu.matmul %85, %86, %cst_27 {dimension_numbers = #tpu.dot_dimension_numbers<[1], [0], [0], [1], [0, 0, 1, 1], [], []>} : vector<8x32xf32>, vector<32x32xf32>, vector<8x32xf32> -> vector<8x32xf32>
    %c0_28 = arith.constant 0 : index
    %c0_29 = arith.constant 0 : index
    %88 = vector.load %arg8[%c0_28, %c0_29] : memref<1x32xf32, #tpu.memory_space<vmem>>, vector<1x32xf32>
    %89 = vector.broadcast %88 : vector<1x32xf32> to vector<8x32xf32>
    %90 = arith.addf %87, %89 : vector<8x32xf32>
    %c0_30 = arith.constant 0 : index
    %c0_31 = arith.constant 0 : index
    %c0_32 = arith.constant 0 : index
    %91 = vector.load %arg9[%c0_30, %c0_31, %c0_32] : memref<1x8x32xf32, #tpu.memory_space<vmem>>, vector<1x8x32xf32>
    %92 = vector.shape_cast %91 : vector<1x8x32xf32> to vector<8x32xf32>
    %93 = vector.shape_cast %90 : vector<8x32xf32> to vector<1x8x32xf32>
    tpu.vector_store %arg9[%c0_30, %c0_31, %c0_32], %93 {strides = array<i32>} : memref<1x8x32xf32, #tpu.memory_space<vmem>>, vector<1x8x32xf32>,
    return
  }
  func.func @transform_0(%arg0: i32) -> (i32, i32, i32) {
    %c0_i32 = arith.constant 0 : i32
    %c0_i32_0 = arith.constant 0 : i32
    %c0_i32_1 = arith.constant 0 : i32
    return %arg0, %c0_i32, %c0_i32_0 : i32, i32, i32
  }
  func.func @transform_1(%arg0: i32) -> (i32, i32) {
    %c0_i32 = arith.constant 0 : i32
    %c0_i32_0 = arith.constant 0 : i32
    %c0_i32_1 = arith.constant 0 : i32
    return %c0_i32, %c0_i32_0 : i32, i32
  }
  func.func @transform_2(%arg0: i32) -> (i32, i32) {
    %c0_i32 = arith.constant 0 : i32
    %c0_i32_0 = arith.constant 0 : i32
    %c0_i32_1 = arith.constant 0 : i32
    return %c0_i32, %c0_i32_0 : i32, i32
  }
  func.func @transform_3(%arg0: i32) -> (i32, i32) {
    %c0_i32 = arith.constant 0 : i32
    %c0_i32_0 = arith.constant 0 : i32
    %c0_i32_1 = arith.constant 0 : i32
    return %c0_i32, %c0_i32_0 : i32, i32
  }
  func.func @transform_4(%arg0: i32) -> (i32, i32) {
    %c0_i32 = arith.constant 0 : i32
    %c0_i32_0 = arith.constant 0 : i32
    %c0_i32_1 = arith.constant 0 : i32
    return %c0_i32, %c0_i32_0 : i32, i32
  }
  func.func @transform_5(%arg0: i32) -> (i32, i32) {
    %c0_i32 = arith.constant 0 : i32
    %c0_i32_0 = arith.constant 0 : i32
    %c0_i32_1 = arith.constant 0 : i32
    return %c0_i32, %c0_i32_0 : i32, i32
  }
  func.func @transform_6(%arg0: i32) -> (i32, i32) {
    %c0_i32 = arith.constant 0 : i32
    %c0_i32_0 = arith.constant 0 : i32
    %c0_i32_1 = arith.constant 0 : i32
    return %c0_i32, %c0_i32_0 : i32, i32
  }
  func.func @transform_7(%arg0: i32) -> (i32, i32) {
    %c0_i32 = arith.constant 0 : i32
    %c0_i32_0 = arith.constant 0 : i32
    %c0_i32_1 = arith.constant 0 : i32
    return %c0_i32, %c0_i32_0 : i32, i32
  }
  func.func @transform_8(%arg0: i32) -> (i32, i32, i32) {
    %c0_i32 = arith.constant 0 : i32
    %c0_i32_0 = arith.constant 0 : i32
    %c0_i32_1 = arith.constant 0 : i32
    return %arg0, %c0_i32, %c0_i32_0 : i32, i32, i32
  }
}

</mosaic_0001>

<bundles_post_ra>
// kernel: tpu_custom_call.1
= control target key start
LH: loop header
LB: loop body
LE: loop exit
PB: predicated region body
PF: predicated region fallthrough
CT: control target
= control target key end

     0   :  { %s1828_s0 = inlined_call_operand.hbm [shape: f32[2,8,32], index: 0, kind: input, shape index: {}]   ;;  %s1829_s1 = inlined_call_operand.hbm [shape: f32[32,32], index: 1, kind: input, shape index: {}]   ;;  %s1830_s2 = inlined_call_operand.hbm [shape: f32[32,32], index: 2, kind: input, shape index: {}]   ;;  %s1831_s3 = inlined_call_operand.hbm [shape: f32[32,32], index: 3, kind: input, shape index: {}]   ;;  %s1832_s4 = inlined_call_operand.vmem [shape: f32[1,8], index: 4, kind: input, shape index: {}]   ;;  %s1833_s5 = inlined_call_operand.vmem [shape: f32[1,8], index: 5, kind: input, shape index: {}]   ;;  %s1834_s6 = inlined_call_operand.hbm [shape: f32[32,32], index: 6, kind: input, shape index: {}]   ;;  %s1835_s7 = inlined_call_operand.vmem [shape: f32[1,32], index: 7, kind: input, shape index: {}]   ;;  %s1836_s8 = inlined_call_operand.hbm [shape: f32[2,8,32], index: 8, kind: output, shape index: {}]  }
   0x1   :  { %1837 = sst [smem:[#allocation16_spill]] %s1829_s1 }
   0x2   :  { %1838 = sst [smem:[#allocation17_spill]] %s1830_s2 }
   0x3   :  { %1839 = sst [smem:[#allocation18_spill]] %s1831_s3 }
   0x4   :  { %13 = vsyncpa [#allocation3], 0 }
   0x5   :  { %15 = vsyncpa [#allocation3 + $0x1], 0 }
   0x6   :  { %16 = vsyncpa [#allocation6], 0 }
   0x7   :  { %17 = vsyncpa [#allocation9], 0 }
   0x8   :  { %18 = vsyncpa [#allocation4], 0 }
   0x9   :  { %20 = vsyncpa [#allocation4 + $0x1], 0  ;;  %s1526_s27 = smov 0   ;;  %s1528_s28 = smov 0  }
   0xa   :  { %s1530_s29 = smov 0   ;;  %s1532_s30 = smov 0  }
   0xb LB: > { %s1840_s1 = sld [smem:[#allocation16_spill]]  ;;  %s1550_s12 = sadd.s32 4294967295, %s1466_s30   ;;  %s1466_s30 = sphi %s1532_s30, %s1854_s30   ;;  %s1462_s29 = sphi %s1530_s29, %s1853_s29   ;;  %s1458_s28 = sphi %s1528_s28, %s1852_s28   ;;  %s1454_s27 = sphi %s1526_s27, %s1851_s27  }
   0xc   : > { %p1074_p0 = scmp.ge.s32.totalorder %s1466_s30, 1  ;;  %p47_p1 = scmp.eq.s32.totalorder %s1550_s12, 0 }
   0xd   : > { %p230_p2 = scmp.lt.s32.totalorder %s1466_s30, 3  ;;  %s1468_s14 = smov [#allocation5]  }
   0xe   : > { %s243_s15 = sshll.u32 %s1468_s14, 4  ;;  %s1842_s3 = sld [smem:[#allocation18_spill]]  ;;  %s244_s15 = int_to_ptr.vmem [resolvable:$true] %s243_s15 }
   0xf   : > { %p1555_p3 = pnand %p1074_p0, %p230_p2  ;;  %s1844_s2 = sld [smem:[#allocation17_spill]] }
  0x10   : > { %s1469_s23 = smov [#allocation8]   ;;  %s1470_s25 = smov 128  }
  0x11   : > { %s241_s11 = sshll.u32 %s1840_s1, 4  ;;  %p1129_p4 = pneg %p1555_p3  ;;  %s242_s11 = int_to_ptr.hbm [resolvable:$true] %s241_s11 }
  0x12   : > { %s271_s24 = sshll.u32 %s1469_s23, 4  ;;  %s1471_s26 = smov 8   ;;  %s272_s24 = int_to_ptr.vmem [resolvable:$true] %s271_s24 }
  0x13   : > { %p1567_p6 = pnand %p1129_p4, %p47_p1  ;;  %s289_s14 = sshll.u32 %s1834_s6, 4  ;;  %s290_s14 = int_to_ptr.hbm [resolvable:$true] %s289_s14 }
  0x14   : > { %s269_s18 = sshll.u32 %s1842_s3, 4  ;;  %s1472_s16 = smov [#allocation7]   ;;  %s270_s18 = int_to_ptr.hbm [resolvable:$true] %s269_s18 }
  0x15   : > { %s255_s22 = sshll.u32 %s1844_s2, 4  ;;  %s257_s17 = sshll.u32 %s1472_s16, 4  ;;  %s256_s22 = int_to_ptr.hbm [resolvable:$true] %s255_s22  ;;  %s258_s17 = int_to_ptr.vmem [resolvable:$true] %s257_s17 }
  0x16   : > { %1132 = dma.hbm_to_vmem [thread:$0]  (!%p1567_p6), %s242_s11, 512, %s244_s15, [#allocation6], %s1470_s25, %s1470_s25, %s1471_s26  }
  0x17   : > { %1138 = dma.hbm_to_vmem [thread:$0]  (!%p1567_p6), %s270_s18, 512, %s272_s24, [#allocation9], %s1470_s25, %s1470_s25, %s1471_s26  }
  0x18   : > { %1135 = dma.hbm_to_vmem [thread:$0]  (!%p1567_p6), %s256_s22, 512, %s258_s17, [#allocation6], %s1470_s25, %s1470_s25, %s1471_s26  }
  0x19   : > { %s1473_s11 = smov [#allocation10]   ;;  %s1073_s18 = sadd.s32 4294967294, %s1466_s30  }
  0x1a   : > { %s291_s15 = sshll.u32 %s1473_s11, 4  ;;  %s1587_s20 = sadd.s32 1, %s1466_s30   ;;  %s292_s15 = int_to_ptr.vmem [resolvable:$true] %s291_s15 }
  0x1b   : > { %1141 = dma.hbm_to_vmem [thread:$0]  (!%p1567_p6), %s290_s14, 512, %s292_s15, [#allocation9], %s1470_s25, %s1470_s25, %s1471_s26  }
  0x1c   : > { %s30_s21 = ssub.s32 %s1466_s30, %s1587_s20  ;;  %s33_s23 = sadd.s32 1, %s1462_s29 }
  0x1d   : > { %p31_p7 = scmp.eq.s32.totalorder %s30_s21, 0  ;;  %p40_p8 = scmp.ne.s32.totalorder %s1462_s29, %s1458_s28 }
  0x1e   : > { %p41_p9 = scmp.eq.s32.totalorder %s1466_s30, 0  ;;  %p46_p10 = scmp.ne.s32.totalorder %s1458_s28, %s1454_s27 }
  0x1f   : > { %s1598_s22 = scalar_select %p31_p7, %s1462_s29, %s33_s23  }
  0x20   : > { %p1600_p11 = por %p41_p9, %p40_p8  ;;  %p1606_p12 = por %p47_p1, %p46_p10 }
  0x21   : > { %p217_p13 = scmp.eq.s32.totalorder %s1550_s12, 1  ;;  %p223_p0 = scmp.eq.s32.totalorder %s1073_s18, 1 }
  0x22   : > { %p1154_p2 = scmp.lt.s32.totalorder %s1466_s30, 2  ;;  %s308_s25 = sand.u32 1, %s1462_s29  }
  0x23   : > { %p1613_p4 = por %p217_p13, %p40_p8  ;;  %p1617_p6 = por %p223_p0, %p46_p10 }
  0x24   : > { %s1080_s10 = sshll.u32 %s308_s25, 3  ;;  %s1081_s14 = sshll.u32 %s1466_s30, 3 }
  0x25   : > { %s316_s11 = scalar_lea.hbm %s1828_s0, %s1081_s14  ;;  %s312_s15 = scalar_lea.vmem [#allocation2], %s1080_s10 }
  0x26   : > { %s320_s21 = sshll.u32 %s312_s15, 4  ;;  %s318_s23 = sshll.u32 %s316_s11, 4  ;;  %s321_s21 = int_to_ptr.vmem [resolvable:$true] %s320_s21  ;;  %s319_s23 = int_to_ptr.hbm [resolvable:$true] %s318_s23 }
  0x27   : > { %p1627_p7 = pnand %p1154_p2, %p1600_p11  ;;  %s309_s1 = scalar_lea.sflag [#allocation3], %s308_s25 }
  0x28   : > { %s1362_s2 = sshra.s32 %s319_s23, 4  ;;  %s1369_s16 = scalar_lea.hbm %s1828_s0, 16  ;;  %s1363_s2 = int_to_ptr.hbm [resolvable:$true] %s1362_s2 }
  0x29   : > { %s1364_s3 = scalar_lea.hbm %s1363_s2, 8  ;;  %p1366_p9 = pneg %p1627_p7 }
  0x2a   : > { %p1365_p8 = scmp.ne.s32.totalorder %s1363_s2, %s1364_s3  ;;  %p1370_p11 = scmp.lt.s32.totalorder %s1363_s2, %s1828_s0 }
  0x2b   : > { %p1371_p0 = scmp.lt.s32.totalorder %s1369_s16, %s1364_s3 }
  0x2c   : > { %p1367_p10 = pnand %p1366_p9, %p1365_p8 }
  0x2d   : > { %p1372_p2 = por %p1371_p0, %p1370_p11 }
  0x2e   : > { %p1368_p13 = pneg %p1367_p10 }
  0x30   : > { %p1373_p5 = pnand %p1372_p2, %p1368_p13 }
  0x32   : > { %1376 = shalt.err (!%p1373_p5)
}
  0x33   : > { %1145 = dma.hbm_to_vmem [thread:$0]  (!%p1627_p7), %s319_s23, 128, %s321_s21, %s309_s1  }
  0x34   : > { %329 = sbr.rel (%p1555_p3) target bundleno = 1246 (0x4de), region = 52  ;;  %s1644_s25 = sand.u32 (!%p1555_p3), 1, %s1458_s28  }
  0x35   : > { %s1083_s11 = sshll.u32 (!%p1555_p3), %s1644_s25, 3  ;;  %s332_s15 = scalar_lea.sflag (!%p1555_p3), [#allocation3], %s1644_s25 }
  0x36   : > { %s335_s2 = scalar_lea.vmem (!%p1555_p3), [#allocation2], %s1083_s11 }
  0x39   : > { %1437 = dma.done.wait (%p1606_p12), %s332_s15, 128  }
  0x3a   : > { %1439 = vsyncadd (%p1606_p12), %s332_s15, 4294967168 }
  0x3b   : > { %1441 = dma.done.wait (%p47_p1), [#allocation6], 1024  }
  0x3c   : > { %1443 = vsyncadd (%p47_p1), [#allocation6], 4294966272 }
  0x3d   : > { %1445 = dma.done.wait (%p47_p1), [#allocation9], 1024  }
  0x3e   : > { %1447 = vsyncadd (%p47_p1), [#allocation9], 4294966272  ;;  %v393_v0 = vld [vmem:[#allocation5 + $0x18] sm:$0xff]  ;;  %v392_v2 = vld [vmem:[#allocation5 + $0x10] sm:$0xff]  ;;  %vm394_vm0 = vcmask 261120   ;;  %s1474_s1 = smov 112  }
  0x3f   : > { %v421_v1 = vld [vmem:[#allocation7 + $0x18] sm:$0xff]  ;;  %410 = vmatpush.msra.mxu0 %v393_v0  ;;  %v420_v3 = vld [vmem:[#allocation7 + $0x10] sm:$0xff]  ;;  %v391_v4 = vld [vmem:[#allocation5 + $0x8] sm:$0xff]  ;;  %s1475_s3 = smov 120   ;;  %s1476_s13 = smov 104   ;;  %vm501_vm1 = vcmask 64512  }
  0x40   : > { %434 = vmatpush.msra.mxu1 %v421_v1  ;;  %v419_v5 = vld [vmem:[#allocation7 + $0x8] sm:$0xff]  ;;  %v390_v6 = vld [vmem:[#allocation5] sm:$0xff]  ;;  %v1662_v8 = vld [vmem:[%s335_s2] sm:$0xff]  ;;  %v1477_v33 = vmov 8.0   ;;  %s1478_s10 = smov 8   ;;  %s1479_s14 = smov 16  }
  0x41   : > { %411 = vmatpush.msra.mxu0 %v392_v2  ;;  %v418_v7 = vld [vmem:[#allocation7] sm:$0xff]  ;;  %1208 = vrcp.f32 %v1477_v33  ;;  %v1727_v58 = vld [vmem:[%s1833_s5] ss:$0 sm:$0xff]  ;;  %s1480_s16 = smov 24   ;;  %s1106_s17 = sshll.u32 %s1550_s12, 3 }
  0x42   : > { %435 = vmatpush.msra.mxu1 %v420_v3  ;;  %v1734_v63 = vld [vmem:[%s1832_s4] ss:$0 sm:$0xff]  ;;  %s960_s2 = scalar_lea.hbm %s1836_s8, %s1106_s17  ;;  %s950_s12 = scalar_lea.sflag [#allocation4], %s1644_s25 }
  0x43   : > { %412 = vmatpush.msra.mxu0 %v391_v4  ;;  %s964_s21 = sshll.u32 %s960_s2, 4  ;;  %s965_s21 = int_to_ptr.hbm [resolvable:$true] %s964_s21 }
  0x44   : > { %436 = vmatpush.msra.mxu1 %v419_v5  ;;  %s1406_s23 = sshra.s32 %s965_s21, 4  ;;  %s1407_s23 = int_to_ptr.hbm [resolvable:$true] %s1406_s23 }
  0x45   : > { %413 = vmatpush.msra.mxu0 %v390_v6  ;;  %s1408_s18 = scalar_lea.hbm %s1407_s23, 8  ;;  %p1413_p12 = scmp.lt.s32.totalorder %s1407_s23, %s1836_s8 }
  0x46   : > { %437 = vmatpush.msra.mxu1 %v418_v7  ;;  %1089 = vmatmul.msk.f32.vlgmr.msra.gmra.mxu0 %vm394_vm0, %v1662_v8  ;;  %p1409_p1 = scmp.ne.s32.totalorder %s1407_s23, %s1408_s18 }
  0x47   : > { %1090 = vmatmul.msk.f32.vlgmr.msra.gmra.mxu1 %vm394_vm0, %v1662_v8  ;;  %v1209_v34 = vpop.eup %1208 }
  0x48   : > { %v515_v35 = vmul.f32 8.0, %v1209_v34  ;;  %vm519_vm2 = vweird.f32 %v1209_v34  ;;  %p1410_p3 = pnand %p1409_p1, %p1613_p4 }
  0x4a   : > { %v516_v36 = vsub.f32 1.0, %v515_v35  ;;  %p1411_p5 = pneg %p1410_p3 }
  0x4c   : > { %v517_v37 = vmul.f32 %v1209_v34, %v516_v36 }
  0x4e   : > { %v518_v38 = vadd.f32 %v1209_v34, %v517_v37 }
  0x50   : > { %v1720_v39 = vsel %vm519_vm2, %v1209_v34, %v518_v38 }
  0xc3   : > { %v1668_v9 = vpop.f32.mrf.mxu0 }
  0xc4   : > { %v1670_v10 = vpop.f32.mrf.mxu1  ;;  %470 = vrot.lane.b32.xlu2 %v1668_v9, %s1474_s1  ;;  %v497_v12 = vmul.f32 %v1668_v9, %v1668_v9 }
  0xc5   : > { %480 = vrot.lane.b32.xlu1 %v1670_v10, %s1474_s1  ;;  %477 = vrot.lane.b32.xlu0 %v1670_v10, %s1475_s3  ;;  %v581_v11 = vmul.f32 %v1670_v10, %v1670_v10 }
  0xc6   : > { %v502_v14 = vsel %vm501_vm1, %v497_v12, 0.0 }
  0xc7   : > { %v585_v13 = vsel %vm501_vm1, %v581_v11, 0.0 }
  0xcc   : > { %473 = vrot.lane.b32.xlu2 %v1668_v9, %s1476_s13 }
  0xcd   : > { %483 = vrot.lane.b32.xlu1 %v1670_v10, %s1476_s13  ;;  %467 = vrot.lane.b32.xlu0 %v1668_v9, %s1475_s3 }
  0xf7   : > { %586 = vadd.xlane.f32.xlu0 %v585_v13  ;;  %503 = vadd.xlane.f32.xlu1 %v502_v14 }
 0x11e   : > { %v1690_v15 = vpop.permute.xlu2 %470 }
 0x11f   : > { %v499_v31 = vmul.f32 %v1690_v15, %v1690_v15 }
 0x121   : > { %v508_v32 = vsel %vm501_vm1, %v499_v31, 0.0 }
 0x126   : > { %v1702_v22 = vpop.permute.xlu2 %473 }
 0x127   : > { %v500_v23 = vmul.f32 %v1702_v22, %v1702_v22 }
 0x129   : > { %v511_v28 = vsel %vm501_vm1, %v500_v23, 0.0 }
 0x137   : > { %v1692_v16 = vpop.permute.xlu1 %480  ;;  %v1694_v17 = vpop.permute.xlu0 %477 }
 0x138   : > { %v583_v18 = vmul.f32 %v1692_v16, %v1692_v16  ;;  %v582_v19 = vmul.f32 %v1694_v17, %v1694_v17 }
 0x13a   : > { %v588_v20 = vsel %vm501_vm1, %v582_v19, 0.0  ;;  %v591_v21 = vsel %vm501_vm1, %v583_v18, 0.0 }
 0x13b   : > { %589 = vadd.xlane.f32.xlu2 %v588_v20  ;;  %592 = vadd.xlane.f32.xlu0 %v591_v21 }
 0x13f   : > { %v1706_v24 = vpop.permute.xlu1 %483  ;;  %v1708_v25 = vpop.permute.xlu0 %467 }
 0x140   : > { %v584_v26 = vmul.f32 %v1706_v24, %v1706_v24  ;;  %v498_v27 = vmul.f32 %v1708_v25, %v1708_v25 }
 0x142   : > { %v505_v29 = vsel %vm501_vm1, %v498_v27, 0.0  ;;  %v594_v30 = vsel %vm501_vm1, %v584_v26, 0.0 }
 0x143   : > { %512 = vadd.xlane.f32.xlu0 %v511_v28  ;;  %506 = vadd.xlane.f32.xlu2 %v505_v29 }
 0x144   : > { %595 = vadd.xlane.f32.xlu1 %v594_v30 }
 0x14b   : > { %509 = vadd.xlane.f32.xlu2 %v508_v32 }
 0x16a   : > { %v587_v40 = vpop.xlane.xlu0 %586  ;;  %v504_v41 = vpop.xlane.xlu1 %503 }
 0x16b   : > { %v597_v42 = vmul.f32 %v587_v40, %v1720_v39  ;;  %v521_v43 = vmul.f32 %v1720_v39, %v504_v41 }
 0x16d   : > { %v601_v44 = vadd.f32 1e-05, %v597_v42  ;;  %v525_v45 = vadd.f32 1e-05, %v521_v43 }
 0x16f   : > { %1210 = vrsqrt.f32 %v601_v44  ;;  %vm611_vm5 = vweird.f32 %v601_v44  ;;  %vm535_vm7 = vweird.f32 %v525_v45 }
 0x170   : > { %1212 = vrsqrt.f32 %v525_v45 }
 0x175   : > { %v1211_v46 = vpop.eup %1210 }
 0x176   : > { %v1213_v47 = vpop.eup %1212  ;;  %v606_v48 = vmul.f32 %v1211_v46, %v601_v44  ;;  %vm612_vm3 = vweird.f32 %v1211_v46 }
 0x177   : > { %v530_v49 = vmul.f32 %v1213_v47, %v525_v45  ;;  %vm536_vm4 = vweird.f32 %v1213_v47  ;;  %vm613_vm6 = vmor %vm611_vm5, %vm612_vm3 }
 0x178   : > { %v607_v50 = vmul.f32 %v1211_v46, %v606_v48  ;;  %vm537_vm8 = vmor %vm535_vm7, %vm536_vm4 }
 0x179   : > { %v531_v51 = vmul.f32 %v1213_v47, %v530_v49 }
 0x17a   : > { %v608_v52 = vmul.f32 0.5, %v607_v50 }
 0x17b   : > { %v532_v53 = vmul.f32 0.5, %v531_v51 }
 0x17c   : > { %v609_v54 = vsub.f32 1.5, %v608_v52 }
 0x17d   : > { %v533_v55 = vsub.f32 1.5, %v532_v53 }
 0x17e   : > { %v610_v56 = vmul.f32 %v1211_v46, %v609_v54 }
 0x17f   : > { %v534_v57 = vmul.f32 %v1213_v47, %v533_v55 }
 0x180   : > { %v614_v59 = vsel %vm613_vm6, %v1211_v46, %v610_v56 }
 0x181   : > { %v645_v60 = vmul.f32 %v614_v59, %v1670_v10  ;;  %v538_v61 = vsel %vm537_vm8, %v1213_v47, %v534_v57 }
 0x182   : > { %v569_v62 = vmul.f32 %v538_v61, %v1668_v9 }
 0x183   : > { %v652_v0 = vmul.f32 %v1727_v58, %v645_v60 }
 0x184   : > { %v576_v1 = vmul.f32 %v1734_v63, %v569_v62 }
 0x185   : > { %1092 = vmatpush.xpose.msk.msra.mxu3 %vm501_vm1, %v652_v0 }
 0x188   : > { %1093 = vmatmul.msk.f32.vlgmr.msra.gmra.mxu3 %vm501_vm1, %v576_v1 }
 0x1ae   : > { %v590_v2 = vpop.xlane.xlu2 %589  ;;  %v593_v3 = vpop.xlane.xlu0 %592 }
 0x1af   : > { %v598_v4 = vmul.f32 %v590_v2, %v1720_v39  ;;  %v599_v5 = vmul.f32 %v593_v3, %v1720_v39 }
 0x1b1   : > { %v602_v6 = vadd.f32 1e-05, %v598_v4  ;;  %v603_v7 = vadd.f32 1e-05, %v599_v5 }
 0x1b3   : > { %1214 = vrsqrt.f32 %v602_v6  ;;  %vm621_vm11 = vweird.f32 %v602_v6  ;;  %vm631_vm13 = vweird.f32 %v603_v7 }
 0x1b4   : > { %1216 = vrsqrt.f32 %v603_v7 }
 0x1b6   : > { %v507_v9 = vpop.xlane.xlu2 %506  ;;  %v513_v10 = vpop.xlane.xlu0 %512 }
 0x1b7   : > { %v522_v11 = vmul.f32 %v1720_v39, %v507_v9  ;;  %v524_v12 = vmul.f32 %v1720_v39, %v513_v10  ;;  %v596_v13 = vpop.xlane.xlu1 %595 }
 0x1b8   : > { %v600_v14 = vmul.f32 %v596_v13, %v1720_v39 }
 0x1b9   : > { %v1215_v18 = vpop.eup %1214  ;;  %v526_v19 = vadd.f32 1e-05, %v522_v11  ;;  %v528_v20 = vadd.f32 1e-05, %v524_v12 }
 0x1ba   : > { %v1217_v21 = vpop.eup %1216  ;;  %v616_v23 = vmul.f32 %v1215_v18, %v602_v6  ;;  %v1745_v26 = vadd.f32 1e-05, %v600_v14  ;;  %vm622_vm9 = vweird.f32 %v1215_v18 }
 0x1bb   : > { %v626_v27 = vmul.f32 %v1217_v21, %v603_v7  ;;  %1218 = vrsqrt.f32 %v526_v19  ;;  %vm632_vm10 = vweird.f32 %v1217_v21  ;;  %vm623_vm12 = vmor %vm621_vm11, %vm622_vm9  ;;  %vm545_vm2 = vweird.f32 %v526_v19 }
 0x1bc   : > { %v617_v28 = vmul.f32 %v1215_v18, %v616_v23  ;;  %1220 = vrsqrt.f32 %v528_v20  ;;  %vm633_vm14 = vmor %vm631_vm13, %vm632_vm10  ;;  %vm565_vm6 = vweird.f32 %v528_v20  ;;  %vm641_vm8 = vweird.f32 %v1745_v26 }
 0x1bd   : > { %v627_v29 = vmul.f32 %v1217_v21, %v626_v27  ;;  %1222 = vrsqrt.f32 %v1745_v26  ;;  %vm913_vm13 = vcmask 130048  }
 0x1be   : > { %v618_v30 = vmul.f32 0.5, %v617_v28  ;;  %v510_v31 = vpop.xlane.xlu2 %509 }
 0x1bf   : > { %v628_v32 = vmul.f32 0.5, %v627_v29  ;;  %v523_v33 = vmul.f32 %v1720_v39, %v510_v31 }
 0x1c0   : > { %v619_v34 = vsub.f32 1.5, %v618_v30 }
 0x1c1   : > { %v1219_v35 = vpop.eup %1218  ;;  %v629_v36 = vsub.f32 1.5, %v628_v32  ;;  %v527_v37 = vadd.f32 1e-05, %v523_v33 }
 0x1c2   : > { %v1221_v38 = vpop.eup %1220  ;;  %v620_v40 = vmul.f32 %v1215_v18, %v619_v34  ;;  %v540_v41 = vmul.f32 %v1219_v35, %v526_v19  ;;  %vm546_vm15 = vweird.f32 %v1219_v35  ;;  %v444_v19 = vld [vmem:[#allocation8 + $0x10] sm:$0xff] }
 0x1c3   : > { %v1223_v42 = vpop.eup %1222  ;;  %v630_v43 = vmul.f32 %v1217_v21, %v629_v36  ;;  %v560_v44 = vmul.f32 %v1221_v38, %v528_v20  ;;  %1224 = vrsqrt.f32 %v527_v37  ;;  %vm566_vm3 = vweird.f32 %v1221_v38  ;;  %vm547_vm5 = vmor %vm545_vm2, %vm546_vm15  ;;  %v442_v20 = vld [vmem:[#allocation8] sm:$0xff] }
 0x1c4   : > { %v541_v45 = vmul.f32 %v1219_v35, %v540_v41  ;;  %v636_v39 = vmul.f32 %v1223_v42, %v1745_v26  ;;  %v624_v47 = vsel %vm623_vm12, %v1215_v18, %v620_v40  ;;  %vm642_vm4 = vweird.f32 %v1223_v42  ;;  %vm567_vm7 = vmor %vm565_vm6, %vm566_vm3 }
 0x1c5   : > { %v561_v46 = vmul.f32 %v1221_v38, %v560_v44  ;;  %v634_v48 = vsel %vm633_vm14, %v1217_v21, %v630_v43  ;;  %v646_v51 = vmul.f32 %v624_v47, %v1694_v17  ;;  %vm643_vm9 = vmor %vm641_vm8, %vm642_vm4  ;;  %vm555_vm11 = vweird.f32 %v527_v37 }
 0x1c6   : > { %v542_v49 = vmul.f32 0.5, %v541_v45  ;;  %v637_v50 = vmul.f32 %v1223_v42, %v636_v39  ;;  %v647_v52 = vmul.f32 %v634_v48, %v1692_v16  ;;  %vm915_vm14 = vcmask 195584  }
 0x1c7   : > { %v562_v53 = vmul.f32 0.5, %v561_v46  ;;  %v653_v56 = vmul.f32 %v1727_v58, %v646_v51 }
 0x1c8   : > { %v543_v54 = vsub.f32 1.5, %v542_v49  ;;  %v638_v55 = vmul.f32 0.5, %v637_v50  ;;  %v654_v57 = vmul.f32 %v1727_v58, %v647_v52 }
 0x1c9   : > { %v1225_v59 = vpop.eup %1224  ;;  %v563_v60 = vsub.f32 1.5, %v562_v53  ;;  %1094 = vmatpush.xpose.msk.msrb.mxu3 %vm501_vm1, %v653_v56 }
 0x1ca   : > { %v544_v61 = vmul.f32 %v1219_v35, %v543_v54  ;;  %v639_v62 = vsub.f32 1.5, %v638_v55  ;;  %v550_v0 = vmul.f32 %v1225_v59, %v527_v37  ;;  %1096 = vmatpush.xpose.msk.msrb.mxu0 %vm501_vm1, %v654_v57  ;;  %vm556_vm10 = vweird.f32 %v1225_v59 }
 0x1cb   : > { %v564_v16 = vmul.f32 %v1221_v38, %v563_v60  ;;  %vm557_vm12 = vmor %vm555_vm11, %vm556_vm10 }
 0x1cc   : > { %v548_v17 = vsel %vm547_vm5, %v1219_v35, %v544_v61  ;;  %v640_v1 = vmul.f32 %v1223_v42, %v639_v62  ;;  %v551_v2 = vmul.f32 %v1225_v59, %v550_v0 }
 0x1cd   : > { %v568_v3 = vsel %vm567_vm7, %v1221_v38, %v564_v16  ;;  %v570_v4 = vmul.f32 %v548_v17, %v1708_v25 }
 0x1ce   : > { %v552_v5 = vmul.f32 0.5, %v551_v2  ;;  %v644_v6 = vsel %vm643_vm9, %v1223_v42, %v640_v1  ;;  %v572_v11 = vmul.f32 %v568_v3, %v1702_v22  ;;  %v445_v22 = vld [vmem:[#allocation8 + $0x18] sm:$0xff] }
 0x1cf   : > { %v577_v7 = vmul.f32 %v1734_v63, %v570_v4  ;;  %v648_v9 = vmul.f32 %v644_v6, %v1706_v24  ;;  %458 = vmatpush.msra.mxu2 %v445_v22 }
 0x1d0   : > { %v553_v10 = vsub.f32 1.5, %v552_v5  ;;  %v579_v14 = vmul.f32 %v1734_v63, %v572_v11  ;;  %v918_v11 = vld [vmem:[#allocation10 + $0x8] sm:$0xff] }
 0x1d1   : > { %1095 = vmatmul.msk.f32.vlgmr.msrb.gmra.mxu3 %vm501_vm1, %v577_v7  ;;  %v655_v12 = vmul.f32 %v1727_v58, %v648_v9  ;;  %v443_v58 = vld [vmem:[#allocation8 + $0x8] sm:$0xff]  ;;  %459 = vmatpush.msra.mxu2 %v444_v19  ;;  %v920_v9 = vld [vmem:[#allocation10 + $0x18] sm:$0xff] }
 0x1d2   : > { %v554_v13 = vmul.f32 %v1225_v59, %v553_v10  ;;  %v919_v10 = vld [vmem:[#allocation10 + $0x10] sm:$0xff] }
 0x1d3   : > { %1098 = vmatpush.xpose.msk.msrb.mxu1 %vm501_vm1, %v655_v12  ;;  %460 = vmatpush.msra.mxu2 %v443_v58  ;;  %v917_v12 = vld [vmem:[#allocation10] sm:$0xff]  ;;  %v1207_v58 = vld [vmem:[%s1835_s7] ss:$0 sm:$0xff] }
 0x1d4   : > { %v558_v25 = vsel %vm557_vm12, %v1225_v59, %v554_v13 }
 0x1d5   : > { %v571_v18 = vmul.f32 %v558_v25, %v1690_v15  ;;  %461 = vmatpush.msra.mxu2 %v442_v20 }
 0x1d6   : > { %1099 = vmatmul.msk.f32.vlgmr.msrb.gmra.mxu1 %vm501_vm1, %v579_v14  ;;  %1091 = vmatmul.msk.f32.vlgmr.msra.gmra.mxu2 %vm394_vm0, %v1662_v8 }
 0x1d7   : > { %v578_v24 = vmul.f32 %v1734_v63, %v571_v18 }
 0x1d9   : > { %1097 = vmatmul.msk.f32.vlgmr.msrb.gmra.mxu0 %vm501_vm1, %v578_v24 }
 0x20b   : > { %v679_v21 = vpop.f32.mrf.mxu3 }
 0x20c   : > { %v760_v32 = vmul.f32 0.35355338, %v679_v21 }
 0x20e   : > { %v764_v33 = vsel %vm501_vm1, %v760_v32, -inf }
 0x253   : > { %v757_v23 = vpop.f32.mrf.mxu1 }
 0x254   : > { %v763_v15 = vmul.f32 0.35355338, %v757_v23  ;;  %v705_v26 = vpop.f32.mrf.mxu3 }
 0x255   : > { %v761_v27 = vmul.f32 0.35355338, %v705_v26 }
 0x256   : > { %v773_v63 = vsel %vm501_vm1, %v763_v15, -inf  ;;  %v731_v28 = vpop.f32.mrf.mxu0 }
 0x257   : > { %774 = vmax.xlane.f32.xlu0 %v773_v63  ;;  %v762_v29 = vmul.f32 0.35355338, %v731_v28  ;;  %v767_v30 = vsel %vm501_vm1, %v761_v27, -inf }
 0x258   : > { %768 = vmax.xlane.f32.xlu1 %v767_v30 }
 0x259   : > { %v770_v31 = vsel %vm501_vm1, %v762_v29, -inf  ;;  %v463_v36 = vpop.f32.mrf.mxu2 }
 0x25a   : > { %771 = vmax.xlane.f32.xlu2 %v770_v31  ;;  %826 = vmatpush.msrb.mxu2 %v463_v36 }
 0x25c   : > { %940 = vmatpush.msra.mxu2 %v920_v9 }
 0x25e   : > { %941 = vmatpush.msra.mxu2 %v919_v10 }
 0x260   : > { %765 = vmax.xlane.f32.xlu1 %v764_v33  ;;  %942 = vmatpush.msra.mxu2 %v918_v11 }
 0x262   : > { %943 = vmatpush.msra.mxu2 %v917_v12 }
 0x2ca   : > { %v775_v8 = vpop.xlane.xlu0 %774 }
 0x2cb   : > { %v779_v34 = vsub.f32 %v763_v15, %v775_v8  ;;  %v769_v35 = vpop.xlane.xlu1 %768 }
 0x2cc   : > { %v777_v37 = vsub.f32 %v761_v27, %v769_v35 }
 0x2cd   : > { %v786_v38 = vmul.f32 1.442695, %v779_v34  ;;  %v772_v40 = vpop.xlane.xlu2 %771 }
 0x2ce   : > { %v782_v41 = vmul.f32 1.442695, %v777_v37  ;;  %v778_v42 = vsub.f32 %v762_v29, %v772_v40 }
 0x2cf   : > { %1226 = vpow2.f32 %v786_v38 }
 0x2d0   : > { %1228 = vpow2.f32 %v782_v41  ;;  %v784_v43 = vmul.f32 1.442695, %v778_v42 }
 0x2d2   : > { %1230 = vpow2.f32 %v784_v43 }
 0x2d3   : > { %v766_v49 = vpop.xlane.xlu1 %765 }
 0x2d4   : > { %v776_v50 = vsub.f32 %v760_v32, %v766_v49 }
 0x2d5   : > { %v1227_v44 = vpop.eup %1226 }
 0x2d6   : > { %v1229_v45 = vpop.eup %1228  ;;  %v797_v39 = vsel %vm501_vm1, %v1227_v44, 0.0  ;;  %v780_v51 = vmul.f32 1.442695, %v776_v50 }
 0x2d7   : > { %798 = vadd.xlane.f32.xlu1 %v797_v39  ;;  %v791_v46 = vsel %vm501_vm1, %v1229_v45, 0.0 }
 0x2d8   : > { %v1231_v47 = vpop.eup %1230  ;;  %792 = vadd.xlane.f32.xlu2 %v791_v46  ;;  %1232 = vpow2.f32 %v780_v51 }
 0x2d9   : > { %v794_v48 = vsel %vm501_vm1, %v1231_v47, 0.0 }
 0x2da   : > { %795 = vadd.xlane.f32.xlu0 %v794_v48 }
 0x2de   : > { %v1233_v52 = vpop.eup %1232 }
 0x2df   : > { %v788_v53 = vsel %vm501_vm1, %v1233_v52, 0.0 }
 0x2ee   : > { %490 = vrot.lane.b32.xlu0 %v463_v36, %s1474_s1 }
 0x2f0   : > { %493 = vrot.lane.b32.xlu1 %v463_v36, %s1476_s13  ;;  %487 = vrot.lane.b32.xlu2 %v463_v36, %s1475_s3  ;;  %s388_s13 = scalar_lea.vmem [#allocation11], %s1083_s11  ;;  %s1412_s11 = scalar_lea.hbm %s1836_s8, 16 }
 0x2f1   : > { %s962_s19 = sshll.u32 %s388_s13, 4  ;;  %p1414_p7 = scmp.lt.s32.totalorder %s1412_s11, %s1408_s18  ;;  %s963_s19 = int_to_ptr.vmem [resolvable:$true] %s962_s19 }
 0x2f3   : > { %p1415_p8 = por %p1414_p7, %p1413_p12 }
 0x2f5   : > { %p1416_p9 = pnand %p1415_p8, %p1411_p5 }
 0x318   : > { %789 = vadd.xlane.f32.xlu0 %v788_v53 }
 0x34a   : > { %v799_v60 = vpop.xlane.xlu1 %798 }
 0x34b   : > { %v793_v54 = vpop.xlane.xlu2 %792 }
 0x34c   : > { %1234 = vrcp.f32 %v793_v54 }
 0x34d   : > { %v796_v59 = vpop.xlane.xlu0 %795 }
 0x34e   : > { %1236 = vrcp.f32 %v796_v59 }
 0x34f   : > { %1238 = vrcp.f32 %v799_v60 }
 0x352   : > { %v1235_v55 = vpop.eup %1234 }
 0x353   : > { %v805_v56 = vmul.f32 %v1235_v55, %v1229_v45  ;;  %v488_v57 = vpop.permute.xlu2 %487 }
 0x354   : > { %849 = vmatpush.msra.mxu3 %v488_v57  ;;  %v1237_v61 = vpop.eup %1236 }
 0x355   : > { %1101 = vmatmul.msk.f32.vlgmr.msra.gmra.mxu3 %vm501_vm1, %v805_v56  ;;  %v1239_v62 = vpop.eup %1238  ;;  %v806_v0 = vmul.f32 %v1237_v61, %v1231_v47 }
 0x356   : > { %v807_v17 = vmul.f32 %v1239_v62, %v1227_v44 }
 0x360   : > { %v491_v16 = vpop.permute.xlu0 %490 }
 0x361   : > { %872 = vmatpush.msra.mxu0 %v491_v16 }
 0x362   : > { %v494_v1 = vpop.permute.xlu1 %493  ;;  %1102 = vmatmul.msk.f32.vlgmr.msra.gmra.mxu0 %vm501_vm1, %v806_v0 }
 0x363   : > { %895 = vmatpush.msra.mxu1 %v494_v1 }
 0x364   : > { %1103 = vmatmul.msk.f32.vlgmr.msra.gmra.mxu1 %vm501_vm1, %v807_v17 }
 0x38b   : > { %v790_v2 = vpop.xlane.xlu0 %789 }
 0x38c   : > { %1240 = vrcp.f32 %v790_v2 }
 0x392   : > { %v1241_v3 = vpop.eup %1240 }
 0x393   : > { %v804_v4 = vmul.f32 %v1241_v3, %v1233_v52 }
 0x395   : > { %1100 = vmatmul.msk.f32.vlgmr.msrb.gmra.mxu2 %vm501_vm1, %v804_v4 }
 0x3d8   : > { %v851_v5 = vpop.f32.mrf.mxu3 }
 0x3d9   : > { %901 = vrot.lane.b32.xlu2 %v851_v5, %s1478_s10 }
 0x3df   : > { %v874_v6 = vpop.f32.mrf.mxu0 }
 0x3e0   : > { %905 = vrot.lane.b32.xlu1 %v874_v6, %s1479_s14 }
 0x3e1   : > { %v897_v7 = vpop.f32.mrf.mxu1 }
 0x3e2   : > { %909 = vrot.lane.b32.xlu2 %v897_v7, %s1480_s16 }
 0x418   : > { %v828_v25 = vpop.f32.mrf.mxu2 }
 0x433   : > { %v902_v13 = vpop.permute.xlu2 %901 }
 0x434   : > { %v912_v14 = vsel %vm501_vm1, %v828_v25, %v902_v13 }
 0x43c   : > { %v910_v24 = vpop.permute.xlu2 %909 }
 0x452   : > { %v906_v18 = vpop.permute.xlu1 %905 }
 0x453   : > { %v914_v22 = vsel %vm913_vm13, %v912_v14, %v906_v18 }
 0x454   : > { %v916_v19 = vsel %vm915_vm14, %v914_v22, %v910_v24 }
 0x455   : > { %1104 = vmatmul.msk.f32.vlgmr.msra.gmra.mxu2 %vm394_vm0, %v916_v19 }
 0x4d8   : > { %v945_v20 = vpop.f32.mrf.mxu2 }
 0x4d9   : > { %v946_v21 = vadd.f32 %v1207_v58, %v945_v20 }
 0x4db   : > { %948 = vst.msk [vmem:[%s388_s13] sm:$0xff] %vm394_vm0, %v946_v21 }
 0x4dc   : > { %1419 = shalt.err (!%p1416_p9)
}
 0x4dd   : > { %1127 = dma.vmem_to_hbm [thread:$0]  (%p1613_p4), %s963_s19, 128, %s965_s21, %s950_s12  }
 0x4de PF: > { %s976_s25 = sand.u32 1, %s1454_s27   ;;  %p1850_p10 = scmp.ge.s32.totalorder %s1466_s30, 2 }
 0x4df   : > { %s977_s24 = scalar_lea.sflag [#allocation4], %s976_s25 }
 0x4e0   : > { %p1147_p13 = pnand %p1850_p10, %p1617_p6 }
 0x4e2   : > { %p1148_p11 = pneg %p1147_p13 }
 0x4e4   : > { %1449 = dma.done.wait (%p1148_p11), %s977_s24, 128  }
 0x4e5   : > { %1451 = vsyncadd (%p1148_p11), %s977_s24, 4294967168  ;;  %p23_p0 = scmp.ge.s32.totalorder %s1587_s20, 4   ;;  %s1851_s27 = smov %s1458_s28 }
 0x4e6   : > { %s1852_s28 = smov %s1462_s29  ;;  %s1853_s29 = smov %s1598_s22 }
 0x4e7   : > { %s1854_s30 = smov %s1587_s20  ;;  %25 = sbr.rel (!%p23_p0) target bundleno = 11 (0xb), region = 113 }
 0x4ec   :  { %983 = vsyncpa [#allocation3], 1 }
 0x4ed   :  { %985 = vsyncpa [#allocation3 + $0x1], 1 }
 0x4ee   :  { %986 = vsyncpa [#allocation6], 1 }
 0x4ef   :  { %987 = vsyncpa [#allocation9], 1 }
 0x4f0   :  { %988 = vsyncpa [#allocation4], 1 }
 0x4f1   :  { %990 = vsyncpa [#allocation4 + $0x1], 1 }

</bundles_post_ra>
